<compile_context>
chip_gen: v7x
topology: tpu7x:2x2x1
jax: 0.10.0
libtpu: 0.0.40
codegen_flags: <defaults>
</compile_context>

<pallas_src>
import functools
import math

import jax
import jax.numpy as jnp
from jax.experimental import pallas as pl
from jax.experimental.pallas import tpu as pltpu


# ------------------------------ small helpers -------------------------------
def _sublane(dtype):
    # dtype-aware sublane multiple: 8 for 4-byte, 16 for bf16, 32 for int8/fp8.
    return max(8, 32 // jnp.dtype(dtype).itemsize)


def _round_up(x, m):
    return (x + m - 1) // m * m


def _pad_rows(a, m_pad):
    m = a.shape[0]
    if m == m_pad:
        return a
    pad = [(0, m_pad - m)] + [(0, 0)] * (a.ndim - 1)
    return jnp.pad(a, pad)


def _row_tile(m, dtype=jnp.float32):
    # Large row tiles to feed the MXU / amortize per-step overhead; small
    # inputs use one full (sublane-rounded) tile.
    for t in (512, 256, 128):
        if m >= t:
            return t
    return _round_up(m, _sublane(dtype))


_VMEM_LIMIT = None


def _vmem_limit_bytes():
    global _VMEM_LIMIT
    if _VMEM_LIMIT is None:
        try:
            cap = int(pltpu.get_tpu_info().vmem_capacity_bytes)
            # ~3/4 of physical VMEM: ~96 MiB on v5e/v6e (128 MiB), 48 MiB on
            # v7x (64 MiB).
            _VMEM_LIMIT = min(cap * 3 // 4, 100 * 1024 * 1024)
        except Exception:
            _VMEM_LIMIT = 48 * 1024 * 1024  # conservative, fits v7x
    return _VMEM_LIMIT


def _cparams(*semantics):
    return pltpu.CompilerParams(
        dimension_semantics=semantics,
        vmem_limit_bytes=_vmem_limit_bytes(),
    )


def _neighbor(y, offset):
    # out[..., j] = y[..., (j + offset) % n].  Uses the XLU (pltpu.roll) when
    # the lane dim is 128-aligned; falls back to a lane concat otherwise.
    n = y.shape[-1]
    if n % 128 == 0:
        return pltpu.roll(y, shift=-offset, axis=-1)
    if offset == 1:
        return jnp.concatenate([y[:, 1:], y[:, :1]], axis=-1)
    return jnp.concatenate([y[:, -1:], y[:, :-1]], axis=-1)


# ----------- fused RMSNorm + Q/K/V projections + RoPE (3 outputs) ------------
def _qkv_rope_kernel(x_ref, nw_ref, wq_ref, wk_ref, wv_ref,
                     cos_ref, sina_ref, sinb_ref,
                     q_ref, k_ref, v_ref, *, eps, n_q_heads, n_kv_heads):
    x = x_ref[...].astype(jnp.float32)                                # (tm, D)
    ms = jnp.mean(x * x, axis=-1, keepdims=True)
    xn = (x * jax.lax.rsqrt(ms + eps)) * nw_ref[...].astype(jnp.float32)
    xn = xn.astype(wq_ref.dtype)

    c = cos_ref[...].astype(jnp.float32)     # (tm, hd): [c0,c0,c1,c1,...]
    sa = sina_ref[...].astype(jnp.float32)   # (tm, hd): [-s0, 0,-s1, 0,...]
    sb = sinb_ref[...].astype(jnp.float32)   # (tm, hd): [ 0,s0,  0,s1,...]

    def rope(y, n_heads):
        # out[j] = y[j]*c[j] + y[j+1]*sa[j] + y[j-1]*sb[j]
        # (wrap-around contributions are multiplied by 0 in sa/sb).
        cf = jnp.tile(c, (1, n_heads))
        af = jnp.tile(sa, (1, n_heads))
        bf = jnp.tile(sb, (1, n_heads))
        return y * cf + _neighbor(y, 1) * af + _neighbor(y, -1) * bf

    q = jnp.dot(xn, wq_ref[...], preferred_element_type=jnp.float32)
    k = jnp.dot(xn, wk_ref[...], preferred_element_type=jnp.float32)
    v = jnp.dot(xn, wv_ref[...], preferred_element_type=jnp.float32)

    q_ref[...] = rope(q, n_q_heads).astype(q_ref.dtype)
    k_ref[...] = rope(k, n_kv_heads).astype(k_ref.dtype)
    v_ref[...] = v.astype(v_ref.dtype)


def qkv_rope_proj(x2d, norm_w, wq_t, wk_t, wv_t, cos_rows, sina_rows, sinb_rows,
                  eps, n_q_heads, n_kv_heads, head_dim):
    M, D = x2d.shape
    Nq, Nk, Nv = wq_t.shape[1], wk_t.shape[1], wv_t.shape[1]
    hd = head_dim
    tm = _row_tile(M, x2d.dtype)
    m_pad = _round_up(M, tm)
    xp = _pad_rows(x2d, m_pad)
    cp = _pad_rows(cos_rows, m_pad)
    sap = _pad_rows(sina_rows, m_pad)
    sbp = _pad_rows(sinb_rows, m_pad)
    nw = norm_w.reshape(1, D)
    kernel = functools.partial(_qkv_rope_kernel, eps=eps, n_q_heads=n_q_heads,
                               n_kv_heads=n_kv_heads)
    q, k, v = pl.pallas_call(
        kernel,
        out_shape=(jax.ShapeDtypeStruct((m_pad, Nq), x2d.dtype),
                   jax.ShapeDtypeStruct((m_pad, Nk), x2d.dtype),
                   jax.ShapeDtypeStruct((m_pad, Nv), x2d.dtype)),
        grid=(m_pad // tm,),
        in_specs=[pl.BlockSpec((tm, D), lambda i: (i, 0)),
                  pl.BlockSpec((1, D), lambda i: (0, 0)),
                  pl.BlockSpec((D, Nq), lambda i: (0, 0)),
                  pl.BlockSpec((D, Nk), lambda i: (0, 0)),
                  pl.BlockSpec((D, Nv), lambda i: (0, 0)),
                  pl.BlockSpec((tm, hd), lambda i: (i, 0)),
                  pl.BlockSpec((tm, hd), lambda i: (i, 0)),
                  pl.BlockSpec((tm, hd), lambda i: (i, 0))],
        out_specs=(pl.BlockSpec((tm, Nq), lambda i: (i, 0)),
                   pl.BlockSpec((tm, Nk), lambda i: (i, 0)),
                   pl.BlockSpec((tm, Nv), lambda i: (i, 0))),
        compiler_params=_cparams("parallel"),
    )(xp, nw, wq_t, wk_t, wv_t, cp, sap, sbp)
    return q[:M], k[:M], v[:M]


# ------------- KV-cache in-place slice write (one DMA per batch) -------------
def kv_cache_write(cache, new, start_pos):
    # cache[:B, start_pos:start_pos+S] = new, done as one HBM->HBM DMA per
    # batch into the aliased cache buffer.  start_pos travels through SMEM so
    # the kernel does not recompile per decode position.
    B, S, Hkv, hd = new.shape
    sp = jnp.asarray([start_pos], jnp.int32)

    def kernel(sp_ref, new_ref, cache_in_ref, out_ref, sem):
        del cache_in_ref  # aliased with out_ref; untouched regions keep data
        b = pl.program_id(0)
        cp = pltpu.make_async_copy(
            new_ref.at[b],
            out_ref.at[b, pl.ds(sp_ref[0], S)],
            sem)
        cp.start()
        cp.wait()

    return pl.pallas_call(
        kernel,
        out_shape=jax.ShapeDtypeStruct(cache.shape, cache.dtype),
        grid=(B,),
        in_specs=[pl.BlockSpec(memory_space=pltpu.MemorySpace.SMEM),
                  pl.BlockSpec(memory_space=pl.ANY),
                  pl.BlockSpec(memory_space=pl.ANY)],
        out_specs=pl.BlockSpec(memory_space=pl.ANY),
        scratch_shapes=[pltpu.SemaphoreType.DMA],
        input_output_aliases={2: 0},
        compiler_params=pltpu.CompilerParams(
            dimension_semantics=("arbitrary",),
            vmem_limit_bytes=_vmem_limit_bytes()),
    )(sp, new, cache)


# --------------- flash attention (online softmax, GQA-grouped) ---------------
def _flash_attn_kernel(q_ref, k_ref, v_ref, o_ref, m_ref, l_ref, acc_ref, *,
                       scale, kv_len, kv_tile):
    t = pl.program_id(2)

    @pl.when(t == 0)
    def _init():
        # finite large-negative init so masked columns never produce NaN
        m_ref[...] = jnp.full(m_ref.shape, -1e30, jnp.float32)
        l_ref[...] = jnp.zeros(l_ref.shape, jnp.float32)
        acc_ref[...] = jnp.zeros(acc_ref.shape, jnp.float32)

    q = q_ref[...].astype(jnp.float32) * scale                        # (G, hd)
    k = k_ref[...].astype(jnp.float32)                                # (tkv, hd)
    s = jax.lax.dot_general(q, k, (((1,), (1,)), ((), ())),
                            preferred_element_type=jnp.float32)       # (G, tkv)
    col = t * kv_tile + jax.lax.broadcasted_iota(jnp.int32, s.shape, 1)
    s = jnp.where(col < kv_len, s, -1e30)

    m_prev = m_ref[...]
    m_new = jnp.maximum(m_prev, jnp.max(s, axis=-1, keepdims=True))
    alpha = jnp.exp(m_prev - m_new)
    p = jnp.exp(s - m_new)
    l_ref[...] = alpha * l_ref[...] + jnp.sum(p, axis=-1, keepdims=True)
    acc_ref[...] = alpha * acc_ref[...] + jnp.dot(
        p.astype(v_ref.dtype), v_ref[...], preferred_element_type=jnp.float32)
    m_ref[...] = m_new

    @pl.when(t == pl.num_programs(2) - 1)
    def _finalize():
        o_ref[...] = (acc_ref[...] *
                      pl.reciprocal(l_ref[...], approx=True)).astype(o_ref.dtype)


def flash_attention_gqa(q, k_cache, v_cache, kv_len, scale):
    # q: (B, Hkv, G, hd) with G = n_rep * Sq (all query heads sharing a KV head
    # stacked along rows);  k_cache/v_cache: FULL (max_batch, max_seq, Hkv, hd)
    # caches — no JAX-side slicing/padding, the tail tile is masked instead.
    B, Hkv, G, hd = q.shape
    _, MS, _, _ = k_cache.shape
    sl = _sublane(k_cache.dtype)
    # tkv=256 matches the 256-wide MXU on v6e/v7x; small kv_len just uses one
    # rounded tile.  (On v5e 128 would also be a fine choice.)
    tkv = min(256, MS, _round_up(kv_len, sl))
    n_kv_steps = pl.cdiv(kv_len, tkv)
    kernel = functools.partial(_flash_attn_kernel, scale=scale, kv_len=kv_len,
                               kv_tile=tkv)
    return pl.pallas_call(
        kernel,
        out_shape=jax.ShapeDtypeStruct((B, Hkv, G, hd), q.dtype),
        grid=(B, Hkv, n_kv_steps),
        in_specs=[
            pl.BlockSpec((None, None, G, hd), lambda b, h, t: (b, h, 0, 0)),
            pl.BlockSpec((None, tkv, None, hd), lambda b, h, t: (b, t, h, 0)),
            pl.BlockSpec((None, tkv, None, hd), lambda b, h, t: (b, t, h, 0)),
        ],
        out_specs=pl.BlockSpec((None, None, G, hd),
                               lambda b, h, t: (b, h, 0, 0)),
        scratch_shapes=[pltpu.VMEM((G, 1), jnp.float32),
                        pltpu.VMEM((G, 1), jnp.float32),
                        pltpu.VMEM((G, hd), jnp.float32)],
        compiler_params=_cparams("parallel", "parallel", "arbitrary"),
    )(q, k_cache, v_cache)


# ------ fused wo-proj + residual + ffn-RMSNorm + SwiGLU + residual kernel -----
def _attn_out_ffn_kernel(a_ref, r_ref, wo_ref, nw_ref, w1_ref, w3_ref, w2_ref,
                         o_ref, *, eps):
    attn = a_ref[...].astype(wo_ref.dtype)                            # (tm, Hq*hd)
    h = r_ref[...].astype(jnp.float32) + jnp.dot(
        attn, wo_ref[...], preferred_element_type=jnp.float32)        # (tm, D)
    ms = jnp.mean(h * h, axis=-1, keepdims=True)
    hn = (h * jax.lax.rsqrt(ms + eps)) * nw_ref[...].astype(jnp.float32)
    hn = hn.astype(w1_ref.dtype)
    a = jnp.dot(hn, w1_ref[...], preferred_element_type=jnp.float32)  # (tm, Hf)
    b = jnp.dot(hn, w3_ref[...], preferred_element_type=jnp.float32)
    g = (a * jax.nn.sigmoid(a)) * b                                   # SiLU gate
    y = jnp.dot(g.astype(w2_ref.dtype), w2_ref[...],
                preferred_element_type=jnp.float32)                   # (tm, D)
    o_ref[...] = (h + y).astype(o_ref.dtype)


def attn_out_ffn(attn2d, x2d, wo_t, ffn_norm_w, w1_t, w3_t, w2_t, eps):
    M, Ka = attn2d.shape
    D = x2d.shape[1]
    Hf = w1_t.shape[1]
    tm = _row_tile(M, x2d.dtype)
    m_pad = _round_up(M, tm)
    ap = _pad_rows(attn2d, m_pad)
    xp = _pad_rows(x2d, m_pad)
    nw = ffn_norm_w.reshape(1, D)
    out = pl.pallas_call(
        functools.partial(_attn_out_ffn_kernel, eps=eps),
        out_shape=jax.ShapeDtypeStruct((m_pad, D), x2d.dtype),
        grid=(m_pad // tm,),
        in_specs=[pl.BlockSpec((tm, Ka), lambda i: (i, 0)),
                  pl.BlockSpec((tm, D), lambda i: (i, 0)),
                  pl.BlockSpec((Ka, D), lambda i: (0, 0)),
                  pl.BlockSpec((1, D), lambda i: (0, 0)),
                  pl.BlockSpec((D, Hf), lambda i: (0, 0)),
                  pl.BlockSpec((D, Hf), lambda i: (0, 0)),
                  pl.BlockSpec((Hf, D), lambda i: (0, 0))],
        out_specs=pl.BlockSpec((tm, D), lambda i: (i, 0)),
        compiler_params=_cparams("parallel"),
    )(ap, xp, wo_t, nw, w1_t, w3_t, w2_t)
    return out[:M]


# -------------------------- EncoderBlock forward ----------------------------
def prepare_kernel_params(params):
    """One-time conversion of nn.Linear-layout weights to kernel layout."""
    kp = dict(params)
    kp["wq_t"] = params["wq"].T   # (D, Hq*hd)
    kp["wk_t"] = params["wk"].T   # (D, Hkv*hd)
    kp["wv_t"] = params["wv"].T   # (D, Hkv*hd)
    kp["wo_t"] = params["wo"].T   # (Hq*hd, D)
    kp["w1_t"] = params["w1"].T   # (D, Hf)
    kp["w3_t"] = params["w3"].T   # (D, Hf)
    kp["w2_t"] = params["w2"].T   # (Hf, D)
    return kp


def encoder_block_forward(kp, x, start_pos, cos, sin, cfg):
    B, S, D = x.shape
    Hq, Hkv, hd = cfg["n_heads"], cfg["n_kv_heads"], cfg["head_dim"]
    n_rep = Hq // Hkv
    eps = cfg["eps"]
    M = B * S

    x2d = x.reshape(M, D)

    # RoPE coefficient rows (per token, per head-dim column):
    #   cos_dup = [c0,c0,c1,c1,...]
    #   sin_a   = [-s0, 0,-s1, 0,...]  (multiplies x[j+1])
    #   sin_b   = [ 0,s0,  0,s1,...]  (multiplies x[j-1])
    cos_dup = jnp.repeat(cos, 2, axis=-1)                             # (S, hd)
    sin_dup = jnp.repeat(sin, 2, axis=-1)
    even = (jnp.arange(hd) % 2 == 0)
    sin_a = jnp.where(even, -sin_dup, 0.0)
    sin_b = jnp.where(even, 0.0, sin_dup)

    def rows(a):
        return jnp.broadcast_to(a[None], (B, S, hd)).reshape(M, hd)

    cos_rows, sa_rows, sb_rows = rows(cos_dup), rows(sin_a), rows(sin_b)

    # fused RMSNorm + QKV projections + RoPE (separate q/k/v outputs)
    q2d, k2d, v2d = qkv_rope_proj(x2d, kp["attn_norm_w"], kp["wq_t"],
                                  kp["wk_t"], kp["wv_t"], cos_rows, sa_rows,
                                  sb_rows, eps, Hq, Hkv, hd)

    xk = k2d.reshape(B, S, Hkv, hd)
    xv = v2d.reshape(B, S, Hkv, hd)

    # in-place KV-cache slice write (aliased, one DMA per batch)
    cache_k = kv_cache_write(kp["cache_k"], xk, start_pos)
    cache_v = kv_cache_write(kp["cache_v"], xv, start_pos)
    kv_len = start_pos + S

    # group the n_rep query heads sharing a KV head along the row dim:
    # (B, S, Hq, hd) -> (B, Hkv, n_rep*S, hd)
    q_grp = (q2d.reshape(B, S, Hkv, n_rep, hd)
                 .transpose(0, 2, 3, 1, 4)
                 .reshape(B, Hkv, n_rep * S, hd))

    attn_grp = flash_attention_gqa(q_grp, cache_k, cache_v, kv_len,
                                   1.0 / math.sqrt(hd))
    # back to token-major (M, Hq*hd); (Hkv, n_rep) flattens to the natural
    # head order h = hkv * n_rep + rep.
    attn2d = (attn_grp.reshape(B, Hkv, n_rep, S, hd)
                      .transpose(0, 3, 1, 2, 4)
                      .reshape(M, Hq * hd))

    # fused wo-proj + residual + ffn-RMSNorm + SwiGLU + residual
    out2d = attn_out_ffn(attn2d, x2d, kp["wo_t"], kp["ffn_norm_w"],
                         kp["w1_t"], kp["w3_t"], kp["w2_t"], eps)
    return out2d.reshape(B, S, D)


# ------------------------- pure-JAX reference --------------------------------
def _rmsnorm_ref(x, w, eps):
    ms = jnp.mean(x.astype(jnp.float32) ** 2, axis=-1, keepdims=True)
    return w * (x * jax.lax.rsqrt(ms + eps))


def _rope_ref(x, cos, sin):
    B, S, H, hd = x.shape
    h2 = hd // 2
    xp = x.reshape(B, S, H, h2, 2)
    xr, xi = xp[..., 0], xp[..., 1]
    c = cos[None, :, None, :]
    s = sin[None, :, None, :]
    o_r = xr * c - xi * s
    o_i = xr * s + xi * c
    return jnp.stack([o_r, o_i], axis=-1).reshape(B, S, H, hd)


def encoder_block_ref(params, x, start_pos, cos, sin, cfg):
    B, S, D = x.shape
    Hq, Hkv, hd = cfg["n_heads"], cfg["n_kv_heads"], cfg["head_dim"]
    n_rep = Hq // Hkv
    eps = cfg["eps"]

    xn = _rmsnorm_ref(x, params["attn_norm_w"], eps)
    xq = (xn @ params["wq"].T).reshape(B, S, Hq, hd)
    xk = (xn @ params["wk"].T).reshape(B, S, Hkv, hd)
    xv = (xn @ params["wv"].T).reshape(B, S, Hkv, hd)
    xq = _rope_ref(xq, cos, sin)
    xk = _rope_ref(xk, cos, sin)

    cache_k = params["cache_k"].at[:B, start_pos:start_pos + S].set(xk)
    cache_v = params["cache_v"].at[:B, start_pos:start_pos + S].set(xv)
    keys = jnp.repeat(cache_k[:B, :start_pos + S], n_rep, axis=2)
    values = jnp.repeat(cache_v[:B, :start_pos + S], n_rep, axis=2)

    q = jnp.transpose(xq, (0, 2, 1, 3))
    k = jnp.transpose(keys, (0, 2, 1, 3))
    v = jnp.transpose(values, (0, 2, 1, 3))
    scores = jnp.einsum("bhqd,bhkd->bhqk", q, k) / math.sqrt(hd)
    probs = jax.nn.softmax(scores.astype(jnp.float32), axis=-1).astype(q.dtype)
    attn = jnp.einsum("bhqk,bhkd->bhqd", probs, v)
    attn = jnp.transpose(attn, (0, 2, 1, 3)).reshape(B, S, Hq * hd)
    h = x + attn @ params["wo"].T

    hn = _rmsnorm_ref(h, params["ffn_norm_w"], eps)
    h1 = hn @ params["w1"].T
    swish = h1 * jax.nn.sigmoid(h1)
    h3 = hn @ params["w3"].T
    ffn = (swish * h3) @ params["w2"].T
    return h + ffn


# ----------------------------------- main -------------------------------------
if __name__ == "__main__":
    # Small ModelArgs: dim=64, n_heads=4, n_kv_heads=2, multiple_of=32,
    # norm_eps=1e-5, max_batch_size=2, max_seq_len=16.
    B, S, D = 2, 8, 64
    n_heads, n_kv_heads = 4, 2
    head_dim = D // n_heads                                          # 16
    multiple_of = 32
    max_batch, max_seq = 2, 16
    eps = 1e-5
    hidden_dim = int(2 * (4 * D) / 3)
    hidden_dim = multiple_of * ((hidden_dim + multiple_of - 1) // multiple_of)  # 192
    start_pos = 0

    cfg = dict(n_heads=n_heads, n_kv_heads=n_kv_heads, head_dim=head_dim, eps=eps)

    key = jax.random.PRNGKey(0)
    ks = jax.random.split(key, 10)
    scale_w = 0.05
    params = {
        "attn_norm_w": 1.0 + 0.1 * jax.random.normal(ks[0], (D,), jnp.float32),
        "ffn_norm_w": 1.0 + 0.1 * jax.random.normal(ks[1], (D,), jnp.float32),
        "wq": scale_w * jax.random.normal(ks[2], (n_heads * head_dim, D), jnp.float32),
        "wk": scale_w * jax.random.normal(ks[3], (n_kv_heads * head_dim, D), jnp.float32),
        "wv": scale_w * jax.random.normal(ks[4], (n_kv_heads * head_dim, D), jnp.float32),
        "wo": scale_w * jax.random.normal(ks[5], (D, n_heads * head_dim), jnp.float32),
        "w1": scale_w * jax.random.normal(ks[6], (hidden_dim, D), jnp.float32),
        "w2": scale_w * jax.random.normal(ks[7], (D, hidden_dim), jnp.float32),
        "w3": scale_w * jax.random.normal(ks[8], (hidden_dim, D), jnp.float32),
        "cache_k": jnp.zeros((max_batch, max_seq, n_kv_heads, head_dim), jnp.float32),
        "cache_v": jnp.zeros((max_batch, max_seq, n_kv_heads, head_dim), jnp.float32),
    }

    # rotary frequencies for positions [start_pos, start_pos + S)
    h2 = head_dim // 2
    inv_freq = 1.0 / (10000.0 ** (jnp.arange(0, h2, dtype=jnp.float32) / h2))
    pos = jnp.arange(start_pos, start_pos + S, dtype=jnp.float32)
    angles = jnp.outer(pos, inv_freq)                                # (S, h2)
    cos, sin = jnp.cos(angles), jnp.sin(angles)

    x = jax.random.normal(ks[9], (B, S, D), jnp.float32)

    kparams = prepare_kernel_params(params)
    out = encoder_block_forward(kparams, x, start_pos, cos, sin, cfg)
    out = jax.block_until_ready(out)

    ref = jax.block_until_ready(encoder_block_ref(params, x, start_pos, cos, sin, cfg))
    max_err = float(jnp.max(jnp.abs(out - ref)))
    assert out.shape == (B, S, D) and max_err < 5e-2, f"mismatch: max_err={max_err}"
    print("KERNEL_OK")
</pallas_src>

<mosaic_0001>
module attributes {stable_mosaic.version = 11 : i64} {
  func.func @_qkv_rope_kernel(%arg0: i32, %arg1: memref<16x64xf32, #tpu.memory_space<vmem>>, %arg2: memref<1x64xf32, #tpu.memory_space<vmem>>, %arg3: memref<64x64xf32, #tpu.memory_space<vmem>>, %arg4: memref<64x32xf32, #tpu.memory_space<vmem>>, %arg5: memref<64x32xf32, #tpu.memory_space<vmem>>, %arg6: memref<16x16xf32, #tpu.memory_space<vmem>>, %arg7: memref<16x16xf32, #tpu.memory_space<vmem>>, %arg8: memref<16x16xf32, #tpu.memory_space<vmem>>, %arg9: memref<16x64xf32, #tpu.memory_space<vmem>>, %arg10: memref<16x32xf32, #tpu.memory_space<vmem>>, %arg11: memref<16x32xf32, #tpu.memory_space<vmem>>) attributes {dimension_semantics = [#tpu.dimension_semantics<parallel>], iteration_bounds = array<i64: 1>, scalar_prefetch = 0 : i64, scratch_operands = 0 : i64, tpu.core_type = #tpu.core_type<tc>, window_params = [{transform_indices = @transform_0, window_bounds = array<i64: 16, 64>}, {pipeline_mode = #tpu.pipeline_mode<synchronous>, transform_indices = @transform_1, window_bounds = array<i64: 1, 64>}, {pipeline_mode = #tpu.pipeline_mode<synchronous>, transform_indices = @transform_2, window_bounds = array<i64: 64, 64>}, {pipeline_mode = #tpu.pipeline_mode<synchronous>, transform_indices = @transform_3, window_bounds = array<i64: 64, 32>}, {pipeline_mode = #tpu.pipeline_mode<synchronous>, transform_indices = @transform_4, window_bounds = array<i64: 64, 32>}, {transform_indices = @transform_5, window_bounds = array<i64: 16, 16>}, {transform_indices = @transform_6, window_bounds = array<i64: 16, 16>}, {transform_indices = @transform_7, window_bounds = array<i64: 16, 16>}, {transform_indices = @transform_8, window_bounds = array<i64: 16, 64>}, {transform_indices = @transform_9, window_bounds = array<i64: 16, 32>}, {transform_indices = @transform_10, window_bounds = array<i64: 16, 32>}]} {
    %c0 = arith.constant 0 : index
    %c0_0 = arith.constant 0 : index
    %0 = vector.load %arg1[%c0, %c0_0] : memref<16x64xf32, #tpu.memory_space<vmem>>, vector<16x64xf32>
    %1 = arith.mulf %0, %0 : vector<16x64xf32>
    %cst = arith.constant dense<0.000000e+00> : vector<16xf32>
    %2 = vector.multi_reduction <add>, %1, %cst [1] : vector<16x64xf32> to vector<16xf32>
    %3 = vector.shape_cast %2 : vector<16xf32> to vector<16x1xf32>
    %cst_1 = arith.constant 6.400000e+01 : f32
    %4 = vector.broadcast %cst_1 : f32 to vector<16x1xf32>
    %5 = arith.divf %3, %4 : vector<16x1xf32>
    %cst_2 = arith.constant 9.99999974E-6 : f32
    %6 = vector.broadcast %cst_2 : f32 to vector<16x1xf32>
    %7 = arith.addf %5, %6 : vector<16x1xf32>
    %8 = math.rsqrt %7 : vector<16x1xf32>
    %9 = vector.broadcast %8 : vector<16x1xf32> to vector<16x64xf32>
    %10 = arith.mulf %0, %9 : vector<16x64xf32>
    %c0_3 = arith.constant 0 : index
    %c0_4 = arith.constant 0 : index
    %11 = vector.load %arg2[%c0_3, %c0_4] : memref<1x64xf32, #tpu.memory_space<vmem>>, vector<1x64xf32>
    %12 = vector.broadcast %11 : vector<1x64xf32> to vector<16x64xf32>
    %13 = arith.mulf %10, %12 : vector<16x64xf32>
    %c0_5 = arith.constant 0 : index
    %c0_6 = arith.constant 0 : index
    %14 = vector.load %arg6[%c0_5, %c0_6] : memref<16x16xf32, #tpu.memory_space<vmem>>, vector<16x16xf32>
    %c0_7 = arith.constant 0 : index
    %c0_8 = arith.constant 0 : index
    %15 = vector.load %arg7[%c0_7, %c0_8] : memref<16x16xf32, #tpu.memory_space<vmem>>, vector<16x16xf32>
    %c0_9 = arith.constant 0 : index
    %c0_10 = arith.constant 0 : index
    %16 = vector.load %arg8[%c0_9, %c0_10] : memref<16x16xf32, #tpu.memory_space<vmem>>, vector<16x16xf32>
    %c0_11 = arith.constant 0 : index
    %c0_12 = arith.constant 0 : index
    %17 = vector.load %arg3[%c0_11, %c0_12] : memref<64x64xf32, #tpu.memory_space<vmem>>, vector<64x64xf32>
    %cst_13 = arith.constant dense<0.000000e+00> : vector<16x64xf32>
    %18 = tpu.matmul %13, %17, %cst_13 {dimension_numbers = #tpu.dot_dimension_numbers<[1], [0], [0], [1], [0, 0, 1, 1], [], []>} : vector<16x64xf32>, vector<64x64xf32>, vector<16x64xf32> -> vector<16x64xf32>
    %c0_14 = arith.constant 0 : index
    %c0_15 = arith.constant 0 : index
    %19 = vector.load %arg4[%c0_14, %c0_15] : memref<64x32xf32, #tpu.memory_space<vmem>>, vector<64x32xf32>
    %cst_16 = arith.constant dense<0.000000e+00> : vector<16x32xf32>
    %20 = tpu.matmul %13, %19, %cst_16 {dimension_numbers = #tpu.dot_dimension_numbers<[1], [0], [0], [1], [0, 0, 1, 1], [], []>} : vector<16x64xf32>, vector<64x32xf32>, vector<16x32xf32> -> vector<16x32xf32>
    %c0_17 = arith.constant 0 : index
    %c0_18 = arith.constant 0 : index
    %21 = vector.load %arg5[%c0_17, %c0_18] : memref<64x32xf32, #tpu.memory_space<vmem>>, vector<64x32xf32>
    %cst_19 = arith.constant dense<0.000000e+00> : vector<16x32xf32>
    %22 = tpu.matmul %13, %21, %cst_19 {dimension_numbers = #tpu.dot_dimension_numbers<[1], [0], [0], [1], [0, 0, 1, 1], [], []>} : vector<16x64xf32>, vector<64x32xf32>, vector<16x32xf32> -> vector<16x32xf32>
    %23 = tpu.concatenate %14, %14, %14, %14 in 1 : vector<16x16xf32>, vector<16x16xf32>, vector<16x16xf32>, vector<16x16xf32> -> vector<16x64xf32>
    %24 = tpu.concatenate %15, %15, %15, %15 in 1 : vector<16x16xf32>, vector<16x16xf32>, vector<16x16xf32>, vector<16x16xf32> -> vector<16x64xf32>
    %25 = tpu.concatenate %16, %16, %16, %16 in 1 : vector<16x16xf32>, vector<16x16xf32>, vector<16x16xf32>, vector<16x16xf32> -> vector<16x64xf32>
    %26 = arith.mulf %18, %23 : vector<16x64xf32>
    %27 = vector.extract_strided_slice %18 {offsets = [0, 1], sizes = [16, 63], strides = [1, 1]} : vector<16x64xf32> to vector<16x63xf32>
    %28 = vector.extract_strided_slice %18 {offsets = [0, 0], sizes = [16, 1], strides = [1, 1]} : vector<16x64xf32> to vector<16x1xf32>
    %29 = tpu.concatenate %27, %28 in 1 : vector<16x63xf32>, vector<16x1xf32> -> vector<16x64xf32>
    %30 = arith.mulf %29, %24 : vector<16x64xf32>
    %31 = arith.addf %26, %30 : vector<16x64xf32>
    %32 = vector.extract_strided_slice %18 {offsets = [0, 63], sizes = [16, 1], strides = [1, 1]} : vector<16x64xf32> to vector<16x1xf32>
    %33 = vector.extract_strided_slice %18 {offsets = [0, 0], sizes = [16, 63], strides = [1, 1]} : vector<16x64xf32> to vector<16x63xf32>
    %34 = tpu.concatenate %32, %33 in 1 : vector<16x1xf32>, vector<16x63xf32> -> vector<16x64xf32>
    %35 = arith.mulf %34, %25 : vector<16x64xf32>
    %36 = arith.addf %31, %35 : vector<16x64xf32>
    %c0_20 = arith.constant 0 : index
    %c0_21 = arith.constant 0 : index
    %37 = vector.load %arg9[%c0_20, %c0_21] : memref<16x64xf32, #tpu.memory_space<vmem>>, vector<16x64xf32>
    tpu.vector_store %arg9[%c0_20, %c0_21], %36 {strides = array<i32>} : memref<16x64xf32, #tpu.memory_space<vmem>>, vector<16x64xf32>,
    %38 = tpu.concatenate %14, %14 in 1 : vector<16x16xf32>, vector<16x16xf32> -> vector<16x32xf32>
    %39 = tpu.concatenate %15, %15 in 1 : vector<16x16xf32>, vector<16x16xf32> -> vector<16x32xf32>
    %40 = tpu.concatenate %16, %16 in 1 : vector<16x16xf32>, vector<16x16xf32> -> vector<16x32xf32>
    %41 = arith.mulf %20, %38 : vector<16x32xf32>
    %42 = vector.extract_strided_slice %20 {offsets = [0, 1], sizes = [16, 31], strides = [1, 1]} : vector<16x32xf32> to vector<16x31xf32>
    %43 = vector.extract_strided_slice %20 {offsets = [0, 0], sizes = [16, 1], strides = [1, 1]} : vector<16x32xf32> to vector<16x1xf32>
    %44 = tpu.concatenate %42, %43 in 1 : vector<16x31xf32>, vector<16x1xf32> -> vector<16x32xf32>
    %45 = arith.mulf %44, %39 : vector<16x32xf32>
    %46 = arith.addf %41, %45 : vector<16x32xf32>
    %47 = vector.extract_strided_slice %20 {offsets = [0, 31], sizes = [16, 1], strides = [1, 1]} : vector<16x32xf32> to vector<16x1xf32>
    %48 = vector.extract_strided_slice %20 {offsets = [0, 0], sizes = [16, 31], strides = [1, 1]} : vector<16x32xf32> to vector<16x31xf32>
    %49 = tpu.concatenate %47, %48 in 1 : vector<16x1xf32>, vector<16x31xf32> -> vector<16x32xf32>
    %50 = arith.mulf %49, %40 : vector<16x32xf32>
    %51 = arith.addf %46, %50 : vector<16x32xf32>
    %c0_22 = arith.constant 0 : index
    %c0_23 = arith.constant 0 : index
    %52 = vector.load %arg10[%c0_22, %c0_23] : memref<16x32xf32, #tpu.memory_space<vmem>>, vector<16x32xf32>
    tpu.vector_store %arg10[%c0_22, %c0_23], %51 {strides = array<i32>} : memref<16x32xf32, #tpu.memory_space<vmem>>, vector<16x32xf32>,
    %c0_24 = arith.constant 0 : index
    %c0_25 = arith.constant 0 : index
    %53 = vector.load %arg11[%c0_24, %c0_25] : memref<16x32xf32, #tpu.memory_space<vmem>>, vector<16x32xf32>
    tpu.vector_store %arg11[%c0_24, %c0_25], %22 {strides = array<i32>} : memref<16x32xf32, #tpu.memory_space<vmem>>, vector<16x32xf32>,
    return
  }
  func.func @transform_0(%arg0: i32) -> (i32, i32) {
    %c0_i32 = arith.constant 0 : i32
    %c0_i32_0 = arith.constant 0 : i32
    return %arg0, %c0_i32 : i32, i32
  }
  func.func @transform_1(%arg0: i32) -> (i32, i32) {
    %c0_i32 = arith.constant 0 : i32
    %c0_i32_0 = arith.constant 0 : i32
    %c0_i32_1 = arith.constant 0 : i32
    return %c0_i32, %c0_i32_0 : i32, i32
  }
  func.func @transform_2(%arg0: i32) -> (i32, i32) {
    %c0_i32 = arith.constant 0 : i32
    %c0_i32_0 = arith.constant 0 : i32
    %c0_i32_1 = arith.constant 0 : i32
    return %c0_i32, %c0_i32_0 : i32, i32
  }
  func.func @transform_3(%arg0: i32) -> (i32, i32) {
    %c0_i32 = arith.constant 0 : i32
    %c0_i32_0 = arith.constant 0 : i32
    %c0_i32_1 = arith.constant 0 : i32
    return %c0_i32, %c0_i32_0 : i32, i32
  }
  func.func @transform_4(%arg0: i32) -> (i32, i32) {
    %c0_i32 = arith.constant 0 : i32
    %c0_i32_0 = arith.constant 0 : i32
    %c0_i32_1 = arith.constant 0 : i32
    return %c0_i32, %c0_i32_0 : i32, i32
  }
  func.func @transform_5(%arg0: i32) -> (i32, i32) {
    %c0_i32 = arith.constant 0 : i32
    %c0_i32_0 = arith.constant 0 : i32
    return %arg0, %c0_i32 : i32, i32
  }
  func.func @transform_6(%arg0: i32) -> (i32, i32) {
    %c0_i32 = arith.constant 0 : i32
    %c0_i32_0 = arith.constant 0 : i32
    return %arg0, %c0_i32 : i32, i32
  }
  func.func @transform_7(%arg0: i32) -> (i32, i32) {
    %c0_i32 = arith.constant 0 : i32
    %c0_i32_0 = arith.constant 0 : i32
    return %arg0, %c0_i32 : i32, i32
  }
  func.func @transform_8(%arg0: i32) -> (i32, i32) {
    %c0_i32 = arith.constant 0 : i32
    %c0_i32_0 = arith.constant 0 : i32
    return %arg0, %c0_i32 : i32, i32
  }
  func.func @transform_9(%arg0: i32) -> (i32, i32) {
    %c0_i32 = arith.constant 0 : i32
    %c0_i32_0 = arith.constant 0 : i32
    return %arg0, %c0_i32 : i32, i32
  }
  func.func @transform_10(%arg0: i32) -> (i32, i32) {
    %c0_i32 = arith.constant 0 : i32
    %c0_i32_0 = arith.constant 0 : i32
    return %arg0, %c0_i32 : i32, i32
  }
}

</mosaic_0001>

<bundles_post_ra>
// kernel: tpu_custom_call.1
= control target key start
LH: loop header
LB: loop body
LE: loop exit
PB: predicated region body
PF: predicated region fallthrough
CT: control target
= control target key end

     0   :  { %16 = vsyncpa [#allocation3], 0  ;;  %vm38_vm0 = vcmask 523264   ;;  %s1109_s0 = inlined_call_operand.vmem [shape: f32[16,64], index: 0, kind: input, shape index: {}]   ;;  %s1110_s1 = inlined_call_operand.vmem [shape: f32[1,64], index: 1, kind: input, shape index: {}]   ;;  %s1111_s2 = inlined_call_operand.vmem [shape: f32[64,64], index: 2, kind: input, shape index: {}]   ;;  %s1112_s3 = inlined_call_operand.vmem [shape: f32[64,32], index: 3, kind: input, shape index: {}]   ;;  %s1113_s4 = inlined_call_operand.vmem [shape: f32[64,32], index: 4, kind: input, shape index: {}]   ;;  %s1114_s5 = inlined_call_operand.vmem [shape: f32[16,16], index: 5, kind: input, shape index: {}]   ;;  %s1115_s6 = inlined_call_operand.vmem [shape: f32[16,16], index: 6, kind: input, shape index: {}]   ;;  %s1116_s7 = inlined_call_operand.vmem [shape: f32[16,16], index: 7, kind: input, shape index: {}]   ;;  %s1117_s8 = inlined_call_operand.hbm [shape: f32[16,64], index: 8, kind: output, shape index: {0}]   ;;  %s1118_s9 = inlined_call_operand.hbm [shape: f32[16,32], index: 9, kind: output, shape index: {1}]   ;;  %s1119_s10 = inlined_call_operand.hbm [shape: f32[16,32], index: 10, kind: output, shape index: {2}]  }
   0x1   :  { %v843_v0 = vld [vmem:[%s1109_s0] sm:$0xff]  ;;  %v848_v1 = vld [vmem:[%s1109_s0 + $0x8] sm:$0xff] }
   0x2   :  { %17 = vsyncpa [#allocation5], 0  ;;  %v36_v2 = vmul.f32 %v843_v0, %v843_v0  ;;  %v37_v3 = vmul.f32 %v848_v1, %v848_v1  ;;  %v69_v6 = vld [vmem:[%s1111_s2] sm:$0xff]  ;;  %v70_v7 = vld [vmem:[%s1111_s2 + $0x8] sm:$0xff]  ;;  %s772_s18 = smov 48   ;;  %vm344_vm1 = vcmask 130048  }
   0x3   :  { %v635_v8 = vpack.c.bf16 %v70_v7, %v69_v6  ;;  %v158_v9 = vld [vmem:[%s1112_s3] sm:$0xff]  ;;  %v159_v10 = vld [vmem:[%s1112_s3 + $0x8] sm:$0xff]  ;;  %v71_v12 = vld [vmem:[%s1111_s2 + $0x10] sm:$0xff]  ;;  %vm347_vm2 = vcmask 261120   ;;  %vm350_vm3 = vcmask 392192   ;;  %s776_s12 = smov 63  }
   0x4   :  { %v39_v4 = vsel %vm38_vm0, %v36_v2, 0.0  ;;  %v42_v5 = vsel %vm38_vm0, %v37_v3, 0.0  ;;  %v651_v11 = vpack.c.bf16 %v159_v10, %v158_v9  ;;  %v72_v13 = vld [vmem:[%s1111_s2 + $0x18] sm:$0xff]  ;;  %v160_v15 = vld [vmem:[%s1112_s3 + $0x10] sm:$0xff]  ;;  %v73_v17 = vld [vmem:[%s1111_s2 + $0x20] sm:$0xff]  ;;  %s777_s13 = smov 97  }
   0x5   :  { %40 = vadd.xlane.f32.xlu0 %v39_v4  ;;  %636 = vmatprep.subr.bf16.mxu0 %v635_v8  ;;  %v639_v14 = vpack.c.bf16 %v72_v13, %v71_v12  ;;  %v161_v16 = vld [vmem:[%s1112_s3 + $0x18] sm:$0xff]  ;;  %v74_v19 = vld [vmem:[%s1111_s2 + $0x28] sm:$0xff]  ;;  %v162_v20 = vld [vmem:[%s1112_s3 + $0x20] sm:$0xff]  ;;  %s778_s14 = smov 1   ;;  %s779_s15 = smov 65   ;;  %vm465_vm4 = vcmask 252928  }
   0x6   :  { %638 = vmatpush3.bf16.msra.mxu0 %v635_v8  ;;  %652 = vmatprep.subr.bf16.mxu1 %v651_v11  ;;  %v655_v18 = vpack.c.bf16 %v161_v16, %v160_v15  ;;  %v163_v21 = vld [vmem:[%s1112_s3 + $0x28] sm:$0xff]  ;;  %v643_v22 = vpack.c.bf16 %v74_v19, %v73_v17  ;;  %v75_v24 = vld [vmem:[%s1111_s2 + $0x30] sm:$0xff]  ;;  %v76_v25 = vld [vmem:[%s1111_s2 + $0x38] sm:$0xff]  ;;  %vm440_vm5 = vcmask 7168   ;;  %vm421_vm6 = vcmask 515072   ;;  %s780_s16 = smov [#allocation4]  }
   0x7   :  { %654 = vmatpush3.bf16.msra.mxu1 %v651_v11  ;;  %640 = vmatprep.subr.bf16.mxu0 %v639_v14  ;;  %v659_v23 = vpack.c.bf16 %v163_v21, %v162_v20  ;;  %v647_v26 = vpack.c.bf16 %v76_v25, %v75_v24  ;;  %v164_v27 = vld [vmem:[%s1112_s3 + $0x30] sm:$0xff]  ;;  %v165_v28 = vld [vmem:[%s1112_s3 + $0x38] sm:$0xff]  ;;  %v241_v30 = vld [vmem:[%s1113_s4] sm:$0xff]  ;;  %s771_s3 = smov 16   ;;  %s511_s17 = sshll.u32 %s780_s16, 4  ;;  %s512_s17 = int_to_ptr.vmem [resolvable:$true] %s511_s17 }
   0x8   :  { %656 = vmatprep.subr.bf16.mxu1 %v655_v18  ;;  %v663_v29 = vpack.c.bf16 %v165_v28, %v164_v27  ;;  %v242_v31 = vld [vmem:[%s1113_s4 + $0x8] sm:$0xff]  ;;  %v913_v33 = vld [vmem:[%s1114_s5] sm:$0xff]  ;;  %v243_v50 = vld [vmem:[%s1113_s4 + $0x10] sm:$0xff]  ;;  %s701_s0 = scalar_lea.vmem %s512_s17, 256  ;;  %p706_p1 = scmp.lt.s32.totalorder %s512_s17, %s512_s17 }
   0x9   :  { %43 = vadd.xlane.f32.xlu0 %v42_v5  ;;  %v667_v32 = vpack.c.bf16 %v242_v31, %v241_v30  ;;  %326 = vrot.lane.b32.xlu1 %v913_v33, %s771_s3  ;;  %v919_v34 = vld [vmem:[%s1115_s6] sm:$0xff]  ;;  %v924_v35 = vld [vmem:[%s1114_s5 + $0x8] sm:$0xff]  ;;  %s773_s5 = smov 32   ;;  %v244_v51 = vld [vmem:[%s1113_s4 + $0x18] sm:$0xff]  ;;  %p702_p0 = scmp.ne.s32.totalorder %s512_s17, %s701_s0 }
   0xa   :  { %642 = vmatpush3.bf16.msra.mxu0 %v639_v14  ;;  %v931_v36 = vld [vmem:[%s1115_s6 + $0x8] sm:$0xff]  ;;  %v953_v38 = vld [vmem:[%s1116_s7] sm:$0xff]  ;;  %v671_v54 = vpack.c.bf16 %v244_v51, %v243_v50  ;;  %v247_v58 = vld [vmem:[%s1113_s4 + $0x30] sm:$0xff]  ;;  %p707_p2 = scmp.lt.s32.totalorder %s701_s0, %s701_s0 }
   0xb   :  { %658 = vmatpush3.bf16.msra.mxu1 %v655_v18  ;;  %644 = vmatprep.subr.bf16.mxu0 %v643_v22  ;;  %v939_v37 = vld [vmem:[%s1116_s7 + $0x8] sm:$0xff]  ;;  %v541_v46 = vld [vmem:[%s1110_s1] ss:$0 sm:$0xff]  ;;  %v248_v59 = vld [vmem:[%s1113_s4 + $0x38] sm:$0xff] }
   0xc   :  { %660 = vmatprep.subr.bf16.mxu1 %v659_v23  ;;  %v245_v55 = vld [vmem:[%s1113_s4 + $0x20] sm:$0xff]  ;;  %v246_v56 = vld [vmem:[%s1113_s4 + $0x28] sm:$0xff]  ;;  %v679_v60 = vpack.c.bf16 %v248_v59, %v247_v58  ;;  %s774_s4 = smov 127   ;;  %p708_p3 = por %p707_p2, %p706_p1 }
   0xd   :  { %328 = vrot.lane.b32.xlu1 %v924_v35, %s771_s3  ;;  %v675_v57 = vpack.c.bf16 %v246_v56, %v245_v55 }
   0xe   :  { %646 = vmatpush3.bf16.msra.mxu0 %v643_v22  ;;  %p709_p4 = pnand %p708_p3, %p702_p0 }
   0xf   :  { %662 = vmatpush3.bf16.msra.mxu1 %v659_v23  ;;  %648 = vmatprep.subr.bf16.mxu0 %v647_v26 }
  0x10   :  { %664 = vmatprep.subr.bf16.mxu1 %v663_v29 }
  0x11   :  { %357 = vrot.lane.b32.xlu1 %v931_v36, %s771_s3 }
  0x12   :  { %650 = vmatpush3.bf16.msra.mxu0 %v647_v26 }
  0x13   :  { %666 = vmatpush3.bf16.msra.mxu1 %v663_v29  ;;  %668 = vmatprep.subr.bf16.mxu0 %v667_v32 }
  0x15   :  { %332 = vrot.lane.b32.xlu1 %v913_v33, %s773_s5 }
  0x19   :  { %334 = vrot.lane.b32.xlu1 %v924_v35, %s773_s5 }
  0x1d   :  { %361 = vrot.lane.b32.xlu1 %v919_v34, %s773_s5 }
  0x1f   :  { %355 = vrot.lane.b32.xlu0 %v919_v34, %s771_s3 }
  0x21   :  { %363 = vrot.lane.b32.xlu1 %v931_v36, %s773_s5 }
  0x23   :  { %340 = vrot.lane.b32.xlu0 %v924_v35, %s772_s18 }
  0x25   :  { %338 = vrot.lane.b32.xlu1 %v913_v33, %s772_s18 }
  0x27   :  { %369 = vrot.lane.b32.xlu0 %v931_v36, %s772_s18 }
  0x29   :  { %367 = vrot.lane.b32.xlu1 %v919_v34, %s772_s18 }
  0x2b   :  { %383 = vrot.lane.b32.xlu0 %v939_v37, %s771_s3 }
  0x2d   :  { %381 = vrot.lane.b32.xlu1 %v953_v38, %s771_s3  ;;  %s775_s3 = smov 31  }
  0x2f   :  { %389 = vrot.lane.b32.xlu0 %v939_v37, %s773_s5 }
  0x31   :  { %387 = vrot.lane.b32.xlu1 %v953_v38, %s773_s5 }
  0x33   :  { %395 = vrot.lane.b32.xlu0 %v939_v37, %s772_s18 }
  0x35   :  { %393 = vrot.lane.b32.xlu1 %v953_v38, %s772_s18  ;;  %s781_s18 = smov [#allocation6]  }
  0x36   :  { %s523_s19 = sshll.u32 %s781_s18, 4  ;;  %s1045_s19 = int_to_ptr.vmem [resolvable:$true] %s523_s19 }
  0x7b   :  { %v327_v61 = vpop.permute.xlu1 %326 }
  0x7c   :  { %v345_v4 = vsel %vm344_vm1, %v913_v33, %v327_v61 }
  0x7f   :  { %v987_v62 = vpop.permute.xlu1 %328 }
  0x83   :  { %v989_v63 = vpop.permute.xlu1 %357 }
  0x92   :  { %v41_v39 = vpop.xlane.xlu0 %40 }
  0x93   :  { %v46_v40 = vmul.f32 0.015625, %v41_v39 }
  0x95   :  { %v48_v41 = vadd.f32 1e-05, %v46_v40 }
  0x96   :  { %v44_v42 = vpop.xlane.xlu0 %43 }
  0x97   :  { %697 = vrsqrt.f32 %v48_v41  ;;  %v47_v43 = vmul.f32 0.015625, %v44_v42  ;;  %v374_v42 = vsel %vm344_vm1, %v931_v36, %v989_v63 }
  0x99   :  { %v49_v44 = vadd.f32 1e-05, %v47_v43 }
  0x9a   :  { %v356_v16 = vpop.permute.xlu0 %355 }
  0x9b   :  { %699 = vrsqrt.f32 %v49_v44  ;;  %v346_v44 = vsel %vm344_vm1, %v924_v35, %v987_v62 }
  0x9e   :  { %v341_v17 = vpop.permute.xlu0 %340 }
  0xa1   :  { %v698_v45 = vpop.eup %697 }
  0xa2   :  { %v52_v47 = vmul.f32 %v698_v45, %v843_v0  ;;  %v333_v0 = vpop.permute.xlu1 %332  ;;  %v370_v18 = vpop.permute.xlu0 %369  ;;  %v373_v45 = vsel %vm344_vm1, %v919_v34, %v356_v16 }
  0xa3   :  { %v348_v5 = vsel %vm347_vm2, %v345_v4, %v333_v0 }
  0xa4   :  { %v61_v48 = vmul.f32 %v541_v46, %v52_v47 }
  0xa5   :  { %v700_v49 = vpop.eup %699 }
  0xa6   :  { %v53_v52 = vmul.f32 %v700_v49, %v848_v1  ;;  %594 = vmatprep.mubr.msk.f32.mxu0 %vm38_vm0, %v61_v48  ;;  %613 = vmatprep.mubr.msk.f32.mxu1 %vm38_vm0, %v61_v48  ;;  %v991_v1 = vpop.permute.xlu1 %334  ;;  %v384_v20 = vpop.permute.xlu0 %383 }
  0xa7   :  { %v349_v50 = vsel %vm347_vm2, %v346_v44, %v991_v1  ;;  %v400_v51 = vsel %vm344_vm1, %v939_v37, %v384_v20 }
  0xa8   :  { %v62_v53 = vmul.f32 %v541_v46, %v53_v52  ;;  %v352_v61 = vsel %vm350_vm3, %v349_v50, %v341_v17 }
  0xaa   :  { %595 = vmatmul.mubr.msk.f32.vlgmr.msra.gmra.mrb[0].mxu0 %vm38_vm0, %v62_v53  ;;  %614 = vmatmul.mubr.msk.f32.vlgmr.msra.gmra.mrb[0].mxu1 %vm38_vm0, %v62_v53  ;;  %v993_v2 = vpop.permute.xlu1 %361  ;;  %v390_v22 = vpop.permute.xlu0 %389 }
  0xab   :  { %670 = vmatpush3.bf16.msra.mxu0 %v667_v32  ;;  %632 = vmatprep.mubr.msk.f32.mxu0 %vm38_vm0, %v61_v48  ;;  %v375_v56 = vsel %vm347_vm2, %v373_v45, %v993_v2  ;;  %v402_v2 = vsel %vm347_vm2, %v400_v51, %v390_v22 }
  0xac   :  { %672 = vmatprep.subr.bf16.mxu0 %v671_v54 }
  0xae   :  { %v995_v3 = vpop.permute.xlu1 %363  ;;  %v1013_v24 = vpop.permute.xlu0 %395 }
  0xaf   :  { %674 = vmatpush3.bf16.msra.mxu0 %v671_v54  ;;  %v376_v36 = vsel %vm347_vm2, %v374_v42, %v995_v3 }
  0xb0   :  { %676 = vmatprep.subr.bf16.mxu0 %v675_v57  ;;  %v378_v62 = vsel %vm350_vm3, %v376_v36, %v370_v18 }
  0xb2   :  { %v339_v6 = vpop.permute.xlu1 %338 }
  0xb3   :  { %678 = vmatpush3.bf16.msra.mxu0 %v675_v57  ;;  %v351_v7 = vsel %vm350_vm3, %v348_v5, %v339_v6 }
  0xb4   :  { %680 = vmatprep.subr.bf16.mxu0 %v679_v60 }
  0xb6   :  { %v368_v19 = vpop.permute.xlu1 %367 }
  0xb7   :  { %682 = vmatpush3.bf16.msra.mxu0 %v679_v60  ;;  %v377_v1 = vsel %vm350_vm3, %v375_v56, %v368_v19 }
  0xba   :  { %633 = vmatmul.mubr.msk.f32.vlgmr.msra.gmra.mrb[2].mxu0 %vm38_vm0, %v62_v53  ;;  %v382_v21 = vpop.permute.xlu1 %381 }
  0xbb   :  { %v399_v34 = vsel %vm344_vm1, %v953_v38, %v382_v21 }
  0xbe   :  { %v388_v23 = vpop.permute.xlu1 %387 }
  0xc2   :  { %v1015_v25 = vpop.permute.xlu1 %393 }
 0x17d   :  { %v1001_v8 = vpop.f32.mrb[0].mxu0  ;;  %v615_v9 = vpop.f32.mrb[0].mxu1 }
 0x17e   :  { %455 = vrot.lane.b32.xlu0 %v615_v9, %s774_s4  ;;  %v149_v10 = vpop.f32.mrb[1].mxu0  ;;  %v232_v11 = vpop.f32.mrb[1].mxu1  ;;  %v450_v48 = vmul.f32 %v615_v9, %v346_v44  ;;  %v406_v6 = vmul.f32 %v1001_v8, %v352_v61 }
 0x17f   :  { %v1003_v12 = vmul.f32 %v345_v4, %v232_v11  ;;  %453 = vrot.lane.b32.xlu1 %v232_v11, %s774_s4  ;;  %v1005_v13 = vmul.f32 %v351_v7, %v149_v10  ;;  %v401_v4 = vsel %vm347_vm2, %v399_v34, %v388_v23 }
 0x182   :  { %461 = vrot.lane.b32.xlu0 %v615_v9, %s775_s3 }
 0x183   :  { %459 = vrot.lane.b32.xlu1 %v232_v11, %s775_s3 }
 0x186   :  { %411 = vrot.lane.b32.xlu0 %v1001_v8, %s774_s4 }
 0x187   :  { %409 = vrot.lane.b32.xlu1 %v149_v10, %s774_s4 }
 0x18a   :  { %417 = vrot.lane.b32.xlu0 %v1001_v8, %s776_s12 }
 0x18b   :  { %415 = vrot.lane.b32.xlu1 %v149_v10, %s776_s12 }
 0x18d   :  { %v634_v14 = vpop.f32.mrb[2].mxu0 }
 0x18e   :  { %493 = vst.msk [vmem:[#allocation6 + $0x8] sm:$0xff] %vm347_vm2, %v634_v14  ;;  %v315_v15 = vpop.f32.mrb[3].mxu0  ;;  %474 = vrot.lane.b32.xlu0 %v615_v9, %s777_s13 }
 0x18f   :  { %492 = vst.msk [vmem:[#allocation6] sm:$0xff] %vm347_vm2, %v315_v15  ;;  %472 = vrot.lane.b32.xlu1 %v232_v11, %s777_s13 }
 0x192   :  { %480 = vrot.lane.b32.xlu0 %v615_v9, %s778_s14 }
 0x193   :  { %478 = vrot.lane.b32.xlu1 %v232_v11, %s778_s14 }
 0x196   :  { %430 = vrot.lane.b32.xlu0 %v1001_v8, %s779_s15 }
 0x197   :  { %428 = vrot.lane.b32.xlu1 %v149_v10, %s779_s15 }
 0x19a   :  { %436 = vrot.lane.b32.xlu0 %v1001_v8, %s778_s14 }
 0x19b   :  { %434 = vrot.lane.b32.xlu1 %v149_v10, %s778_s14 }
 0x1f0   :  { %v456_v26 = vpop.permute.xlu0 %455 }
 0x1f1   :  { %v454_v27 = vpop.permute.xlu1 %453 }
 0x1f4   :  { %v462_v28 = vpop.permute.xlu0 %461 }
 0x1f5   :  { %v460_v29 = vpop.permute.xlu1 %459  ;;  %v467_v39 = vsel %vm465_vm4, %v456_v26, %v462_v28 }
 0x1f6   :  { %v466_v40 = vsel %vm465_vm4, %v454_v27, %v460_v29  ;;  %v469_v46 = vmul.f32 %v467_v39, %v374_v42 }
 0x1f7   :  { %v468_v47 = vmul.f32 %v466_v40, %v373_v45 }
 0x1f8   :  { %v412_v30 = vpop.permute.xlu0 %411  ;;  %v471_v53 = vadd.f32 %v469_v46, %v450_v48 }
 0x1f9   :  { %v410_v31 = vpop.permute.xlu1 %409  ;;  %v470_v57 = vadd.f32 %v468_v47, %v1003_v12 }
 0x1fc   :  { %v418_v32 = vpop.permute.xlu0 %417 }
 0x1fd   :  { %v416_v33 = vpop.permute.xlu1 %415  ;;  %v423_v58 = vsel %vm421_vm6, %v412_v30, %v418_v32 }
 0x1fe   :  { %v422_v59 = vsel %vm421_vm6, %v410_v31, %v416_v33  ;;  %v425_v3 = vmul.f32 %v423_v58, %v378_v62 }
 0x1ff   :  { %v424_v5 = vmul.f32 %v422_v59, %v377_v1 }
 0x200   :  { %v475_v41 = vpop.permute.xlu0 %474 }
 0x201   :  { %v473_v43 = vpop.permute.xlu1 %472 }
 0x204   :  { %v481_v49 = vpop.permute.xlu0 %480 }
 0x205   :  { %v485_v35 = vsel %vm440_vm5, %v475_v41, %v481_v49  ;;  %v479_v52 = vpop.permute.xlu1 %478 }
 0x206   :  { %v487_v54 = vmul.f32 %v485_v35, %v400_v51  ;;  %v484_v55 = vsel %vm440_vm5, %v473_v43, %v479_v52 }
 0x207   :  { %v486_v37 = vmul.f32 %v484_v55, %v399_v34 }
 0x208   :  { %v489_v60 = vadd.f32 %v487_v54, %v471_v53  ;;  %v431_v38 = vpop.permute.xlu0 %430 }
 0x209   :  { %v488_v63 = vadd.f32 %v486_v37, %v470_v57  ;;  %v429_v0 = vpop.permute.xlu1 %428 }
 0x20a   :  { %491 = vst.msk [vmem:[#allocation4 + $0x8] sm:$0xff] %vm347_vm2, %v489_v60 }
 0x20b   :  { %490 = vst.msk [vmem:[#allocation4] sm:$0xff] %vm347_vm2, %v488_v63 }
 0x20c   :  { %v437_v7 = vpop.permute.xlu0 %436 }
 0x20d   :  { %712 = shalt.err (!%p709_p4)
}
 0x20e   :  { %s713_s20 = scalar_lea.hbm %s1118_s9, 256 }
 0x20f   :  { %p714_p5 = scmp.ne.s32.totalorder %s1118_s9, %s713_s20  ;;  %p717_p6 = scmp.lt.u32.totalorder %s713_s20, %s1118_s9 }
 0x211   :  { %p719_p7 = pnand %p717_p6, %p714_p5 }
 0x213   :  { %722 = shalt.err (!%p719_p7)
}
 0x214   :  { %s782_s24 = smov 128   ;;  %s783_s25 = smov 8   ;;  %v404_v8 = vsel %vm350_vm3, %v402_v2, %v1013_v24  ;;  %v442_v9 = vsel %vm440_vm5, %v431_v38, %v437_v7  ;;  %v435_v10 = vpop.permute.xlu1 %434 }
 0x215   :  { %517 = dma.vmem_to_hbm [thread:$0]  %s512_s17, 256, %s1118_s9, [#allocation5], %s782_s24, %s782_s24, %s783_s25  }
 0x216   :  { %s723_s2 = scalar_lea.vmem %s1045_s19, 256  ;;  %p728_p9 = scmp.lt.s32.totalorder %s1045_s19, %s1045_s19 }
 0x217   :  { %p724_p8 = scmp.ne.s32.totalorder %s1045_s19, %s723_s2  ;;  %p729_p10 = scmp.lt.s32.totalorder %s723_s2, %s723_s2 }
 0x219   :  { %p730_p11 = por %p729_p10, %p728_p9 }
 0x21b   :  { %p731_p12 = pnand %p730_p11, %p724_p8 }
 0x21d   :  { %734 = shalt.err (!%p731_p12)
}
 0x21e   :  { %s735_s29 = scalar_lea.hbm %s1119_s10, 256 }
 0x21f   :  { %p736_p13 = scmp.ne.s32.totalorder %s1119_s10, %s735_s29  ;;  %p739_p0 = scmp.lt.u32.totalorder %s735_s29, %s1119_s10 }
 0x221   :  { %p741_p1 = pnand %p739_p0, %p736_p13 }
 0x223   :  { %744 = shalt.err (!%p741_p1)
}
 0x224   :  { %529 = dma.vmem_to_hbm [thread:$0]  %s1045_s19, 256, %s1119_s10, [#allocation5], %s782_s24, %s782_s24, %s783_s25   ;;  %v403_v11 = vsel %vm350_vm3, %v401_v4, %v1015_v25  ;;  %v427_v12 = vadd.f32 %v425_v3, %v406_v6  ;;  %v444_v14 = vmul.f32 %v442_v9, %v404_v8  ;;  %v441_v15 = vsel %vm440_vm5, %v429_v0, %v435_v10 }
 0x225   :  { %s784_s13 = smov [#allocation2]   ;;  %v426_v16 = vadd.f32 %v424_v5, %v1005_v13  ;;  %v443_v17 = vmul.f32 %v441_v15, %v403_v11 }
 0x226   :  { %s499_s14 = sshll.u32 %s784_s13, 4  ;;  %v446_v18 = vadd.f32 %v444_v14, %v427_v12  ;;  %s500_s14 = int_to_ptr.vmem [resolvable:$true] %s499_s14 }
 0x227   :  { %v445_v19 = vadd.f32 %v443_v17, %v426_v16  ;;  %s745_s10 = scalar_lea.vmem %s500_s14, 256  ;;  %p750_p3 = scmp.lt.s32.totalorder %s500_s14, %s500_s14 }
 0x228   :  { %448 = vst.msk [vmem:[#allocation2 + $0x8] sm:$0xff] %vm38_vm0, %v446_v18  ;;  %p746_p2 = scmp.ne.s32.totalorder %s500_s14, %s745_s10  ;;  %p751_p4 = scmp.lt.s32.totalorder %s745_s10, %s745_s10 }
 0x229   :  { %447 = vst.msk [vmem:[#allocation2] sm:$0xff] %vm38_vm0, %v445_v19 }
 0x22a   :  { %p752_p5 = por %p751_p4, %p750_p3 }
 0x22c   :  { %p753_p6 = pnand %p752_p5, %p746_p2 }
 0x22e   :  { %756 = shalt.err (!%p753_p6)
}
 0x22f   :  { %s757_s17 = scalar_lea.hbm %s1117_s8, 256 }
 0x230   :  { %p758_p7 = scmp.ne.s32.totalorder %s1117_s8, %s757_s17  ;;  %p761_p8 = scmp.lt.u32.totalorder %s757_s17, %s1117_s8 }
 0x232   :  { %p763_p9 = pnand %p761_p8, %p758_p7 }
 0x234   :  { %766 = shalt.err (!%p763_p9)
}
 0x235   :  { %505 = dma.vmem_to_hbm [thread:$0]  %s500_s14, 256, %s1117_s8, [#allocation3], %s782_s24, %s782_s24, %s783_s25  }
 0x236   :  { %767 = dma.done.wait [#allocation3], 256  }
 0x237   :  { %768 = vsyncadd [#allocation3], 4294967040 }
 0x238   :  { %769 = dma.done.wait [#allocation5], 512  }
 0x239   :  { %770 = vsyncadd [#allocation5], 4294966784 }
 0x23a   :  { %539 = vsyncpa [#allocation3], 1 }
 0x23b   :  { %540 = vsyncpa [#allocation5], 1 }

</bundles_post_ra>
